<compile_context>
chip_gen: v5e
topology: v5e:2x2
jax: 0.10.0
libtpu: 0.0.40
codegen_flags: <defaults>
</compile_context>

<pallas_src>
import functools

import jax
import jax.numpy as jnp
from jax.experimental import pallas as pl
from jax.experimental.pallas import tpu as pltpu

LN_EPS = 1e-5  # PyTorch nn.LayerNorm default


def _round_up(x, m):
    return (x + m - 1) // m * m


def _critic_kernel(x_ref, w_ref, out_ref, *, L, H1p, PA, hidden1, hidden2):
    # ---- static, 8-row-aligned slices into the packed slabs ----------------
    r1 = L                       # start of w2_h rows
    r2 = r1 + H1p                # start of w2_pa rows
    r3 = r2 + PA                 # start of the 8 packed vector rows

    x_laser = x_ref[:, 0:L]              # (B, L)   laser (+ zero pad cols)
    x_pa = x_ref[:, L:L + PA]            # (B, PA)  [pos | a | zero pad]

    w1 = w_ref[0:L, 0:hidden1]           # (L, hidden1)   zero-padded rows
    w2h = w_ref[r1:r1 + hidden1, 0:hidden2]   # (hidden1, hidden2)
    w2pa = w_ref[r2:r3, 0:hidden2]       # (PA, hidden2)  zero-padded rows

    b1 = w_ref[r3 + 0:r3 + 1, 0:hidden1]
    g1 = w_ref[r3 + 1:r3 + 2, 0:hidden1]
    be1 = w_ref[r3 + 2:r3 + 3, 0:hidden1]
    b2 = w_ref[r3 + 3:r3 + 4, 0:hidden2]
    g2 = w_ref[r3 + 4:r3 + 5, 0:hidden2]
    be2 = w_ref[r3 + 5:r3 + 6, 0:hidden2]
    w3r = w_ref[r3 + 6:r3 + 7, 0:hidden2]    # fc3 weight as a row
    b3 = w_ref[r3 + 7:r3 + 8, 0:1]           # fc3 bias (scalar at lane 0)

    # ---- fc1 + LayerNorm1 + ReLU -------------------------------------------
    h1 = jnp.dot(x_laser, w1, preferred_element_type=jnp.float32) + b1
    mu1 = jnp.mean(h1, axis=-1, keepdims=True)
    d1 = h1 - mu1
    var1 = jnp.mean(d1 * d1, axis=-1, keepdims=True)
    h1 = d1 * jax.lax.rsqrt(var1 + LN_EPS) * g1 + be1
    h1 = jnp.maximum(h1, 0.0)

    # ---- fc2 on concat([h1, pos, a]) as two summed MXU dots ----------------
    h2 = (jnp.dot(h1, w2h, preferred_element_type=jnp.float32)
          + jnp.dot(x_pa, w2pa, preferred_element_type=jnp.float32)
          + b2)

    # ---- LayerNorm2 + ReLU ---------------------------------------------------
    mu2 = jnp.mean(h2, axis=-1, keepdims=True)
    d2 = h2 - mu2
    var2 = jnp.mean(d2 * d2, axis=-1, keepdims=True)
    h2 = d2 * jax.lax.rsqrt(var2 + LN_EPS) * g2 + be2
    h2 = jnp.maximum(h2, 0.0)

    # ---- fc3: VPU multiply + XLU lane reduction (skip N=1 MXU matmul) ------
    q = jnp.sum(h2 * w3r, axis=-1, keepdims=True) + b3
    out_ref[...] = q.astype(out_ref.dtype)


def prepare_params(params, nb_pos, nb_laser, nb_actions):
    """One-time packing of every Critic parameter into a single (R, F) slab.

    Row layout (all section starts are multiples of 8):
      [0        : L        )  fc1 weight  (nb_laser rows, zero-padded to L)
      [L        : L+H1p    )  fc2 weight, h1 rows      (padded to H1p)
      [L+H1p    : L+H1p+PA )  fc2 weight, pos|a rows   (padded to PA)
      [L+H1p+PA : +8       )  b1, ln1_g, ln1_b, b2, ln2_g, ln2_b, w3-row, b3
    Call this ONCE (outside the per-step path) and reuse the returned slab.
    """
    hidden1 = params["w1"].shape[1]
    hidden2 = params["w2_h"].shape[1]
    F = max(hidden1, hidden2)
    L = _round_up(nb_laser, 8)
    H1p = _round_up(hidden1, 8)
    PA = _round_up(nb_pos + nb_actions, 8)

    def pad2(w, rows, cols):
        w = jnp.asarray(w, jnp.float32)
        return jnp.zeros((rows, cols), jnp.float32).at[
            :w.shape[0], :w.shape[1]].set(w)

    w2_pa = jnp.concatenate([params["w2_p"], params["w2_a"]], axis=0)
    w_slab = jnp.concatenate([
        pad2(params["w1"], L, F),
        pad2(params["w2_h"], H1p, F),
        pad2(w2_pa, PA, F),
        pad2(params["b1"], 1, F),
        pad2(params["ln1_g"], 1, F),
        pad2(params["ln1_b"], 1, F),
        pad2(params["b2"], 1, F),
        pad2(params["ln2_g"], 1, F),
        pad2(params["ln2_b"], 1, F),
        pad2(params["w3"].T, 1, F),   # (1, hidden2)
        pad2(params["b3"], 1, F),     # scalar at lane 0
    ], axis=0)                        # (L + H1p + PA + 8, F)
    return jax.device_put(w_slab)


@functools.partial(
    jax.jit,
    static_argnames=("nb_pos", "nb_laser", "nb_actions", "hidden1", "hidden2"))
def critic_forward(pos, laser, a, w_slab, *, nb_pos, nb_laser, nb_actions,
                   hidden1, hidden2):
    """Whole Critic MLP in one gridless Pallas kernel invocation.

    Per-call XLA work is a single small concat (the merged activation slab);
    all parameter packing lives in `prepare_params`.
    """
    B = laser.shape[0]
    L = _round_up(nb_laser, 8)
    H1p = _round_up(hidden1, 8)
    PA = _round_up(nb_pos + nb_actions, 8)

    # ---- merged activation slab: [laser | 0pad | pos | a | 0pad] -----------
    parts = [laser.astype(jnp.float32)]
    if L > nb_laser:
        parts.append(jnp.zeros((B, L - nb_laser), jnp.float32))
    parts.append(pos.astype(jnp.float32))
    parts.append(a.astype(jnp.float32))
    if PA > nb_pos + nb_actions:
        parts.append(jnp.zeros((B, PA - (nb_pos + nb_actions)), jnp.float32))
    x = jnp.concatenate(parts, axis=1)            # (B, L + PA)

    kernel = functools.partial(
        _critic_kernel, L=L, H1p=H1p, PA=PA, hidden1=hidden1, hidden2=hidden2)

    flops = 2 * B * (nb_laser * hidden1
                     + (hidden1 + nb_pos + nb_actions) * hidden2
                     + hidden2)
    bytes_accessed = 4 * (x.size + w_slab.size + B)

    vmem = pl.BlockSpec(memory_space=pltpu.MemorySpace.VMEM)
    # TODO(synk): if run at training batch sizes (B >= 256) on v7x, add a
    # "parallel" batch grid axis to shard across its two TensorCores; at B=8
    # the per-grid-step pipeline overhead would outweigh any gain.
    return pl.pallas_call(
        kernel,
        out_shape=jax.ShapeDtypeStruct((B, 1), jnp.float32),
        in_specs=[vmem, vmem],
        out_specs=vmem,
        cost_estimate=pl.CostEstimate(
            flops=flops, transcendentals=2 * B,
            bytes_accessed=bytes_accessed),
    )(x, w_slab)


def make_params(key, nb_pos, nb_laser, nb_actions, hidden1, hidden2,
                init_w=0.003):
    """Deterministic synthetic init mirroring the PyTorch Critic.__init__
    shapes/scales (fanin_init for fc1/fc2 weights, uniform(-init_w, init_w)
    for fc3 weight, default nn.Linear bias init, LN gamma=1 / beta=0)."""
    ks = jax.random.split(key, 6)

    def unif(k, shape, bound):
        return jax.random.uniform(k, shape, jnp.float32, -bound, bound)

    # fanin_init uses size[0] of the torch (out, in) weight, i.e. `out`.
    w1 = unif(ks[0], (nb_laser, hidden1), 1.0 / jnp.sqrt(hidden1))
    b1 = unif(ks[1], (1, hidden1), 1.0 / jnp.sqrt(nb_laser))

    in2 = hidden1 + nb_pos + nb_actions
    w2 = unif(ks[2], (in2, hidden2), 1.0 / jnp.sqrt(hidden2))
    b2 = unif(ks[3], (1, hidden2), 1.0 / jnp.sqrt(in2))

    w3 = unif(ks[4], (hidden2, 1), init_w)
    b3 = unif(ks[5], (1, 1), 1.0 / jnp.sqrt(hidden2))

    return {
        "w1": w1, "b1": b1,
        "ln1_g": jnp.ones((1, hidden1), jnp.float32),
        "ln1_b": jnp.zeros((1, hidden1), jnp.float32),
        # fc2 weight split along its input rows: [h1 | pos | a]
        "w2_h": w2[:hidden1], "w2_p": w2[hidden1:hidden1 + nb_pos],
        "w2_a": w2[hidden1 + nb_pos:],
        "b2": b2,
        "ln2_g": jnp.ones((1, hidden2), jnp.float32),
        "ln2_b": jnp.zeros((1, hidden2), jnp.float32),
        "w3": w3, "b3": b3,
    }


def critic_reference(pos, laser, a, p):
    """Pure-JAX reference of the PyTorch forward pass."""
    def ln(x, g, b):
        mu = jnp.mean(x, axis=-1, keepdims=True)
        var = jnp.mean((x - mu) ** 2, axis=-1, keepdims=True)
        return (x - mu) * jax.lax.rsqrt(var + LN_EPS) * g + b

    out = laser @ p["w1"] + p["b1"]
    out = jax.nn.relu(ln(out, p["ln1_g"], p["ln1_b"]))
    w2 = jnp.concatenate([p["w2_h"], p["w2_p"], p["w2_a"]], axis=0)
    cat = jnp.concatenate([out, pos, a], axis=1)
    out = cat @ w2 + p["b2"]
    out = jax.nn.relu(ln(out, p["ln2_g"], p["ln2_b"]))
    return out @ p["w3"] + p["b3"]


if __name__ == "__main__":
    # Small shapes consistent with the module's forward signature.
    B, NB_POS, NB_LASER, NB_ACTIONS = 8, 4, 32, 2
    HIDDEN1, HIDDEN2 = 64, 64

    root = jax.random.PRNGKey(0)
    k_params, k_pos, k_laser, k_act = jax.random.split(root, 4)

    params = make_params(k_params, NB_POS, NB_LASER, NB_ACTIONS,
                         HIDDEN1, HIDDEN2)
    # One-time packing (NOT on the per-step path).
    w_slab = prepare_params(params, NB_POS, NB_LASER, NB_ACTIONS)

    pos = jax.random.normal(k_pos, (B, NB_POS), jnp.float32)
    laser = jax.random.normal(k_laser, (B, NB_LASER), jnp.float32)
    act = jax.random.normal(k_act, (B, NB_ACTIONS), jnp.float32)

    out = critic_forward(pos, laser, act, w_slab,
                         nb_pos=NB_POS, nb_laser=NB_LASER,
                         nb_actions=NB_ACTIONS,
                         hidden1=HIDDEN1, hidden2=HIDDEN2)
    out = jax.block_until_ready(out)

    ref = critic_reference(pos, laser, act, params)
    assert out.shape == (B, 1), out.shape
    assert jnp.allclose(out, ref, atol=1e-4, rtol=1e-4), (out, ref)

    print("KERNEL_OK")
</pallas_src>

<mosaic_0001>
module attributes {stable_mosaic.version = 11 : i64} {
  func.func @_critic_kernel(%arg0: memref<8x40xf32, #tpu.memory_space<vmem>>, %arg1: memref<112x64xf32, #tpu.memory_space<vmem>>, %arg2: memref<8x1xf32, #tpu.memory_space<vmem>>) attributes {dimension_semantics = [], scalar_prefetch = 0 : i64, scratch_operands = 0 : i64, tpu.core_type = #tpu.core_type<tc>} {
    %c0 = arith.constant 0 : index
    %c0_0 = arith.constant 0 : index
    %0 = vector.load %arg0[%c0, %c0_0] : memref<8x40xf32, #tpu.memory_space<vmem>>, vector<8x32xf32>
    %c0_1 = arith.constant 0 : index
    %c32 = arith.constant 32 : index
    %1 = vector.load %arg0[%c0_1, %c32] : memref<8x40xf32, #tpu.memory_space<vmem>>, vector<8x8xf32>
    %c0_2 = arith.constant 0 : index
    %c0_3 = arith.constant 0 : index
    %2 = vector.load %arg1[%c0_2, %c0_3] : memref<112x64xf32, #tpu.memory_space<vmem>>, vector<32x64xf32>
    %c32_4 = arith.constant 32 : index
    %c0_5 = arith.constant 0 : index
    %3 = vector.load %arg1[%c32_4, %c0_5] : memref<112x64xf32, #tpu.memory_space<vmem>>, vector<64x64xf32>
    %c96 = arith.constant 96 : index
    %c0_6 = arith.constant 0 : index
    %4 = vector.load %arg1[%c96, %c0_6] : memref<112x64xf32, #tpu.memory_space<vmem>>, vector<8x64xf32>
    %c104 = arith.constant 104 : index
    %c0_7 = arith.constant 0 : index
    %5 = vector.load %arg1[%c104, %c0_7] : memref<112x64xf32, #tpu.memory_space<vmem>>, vector<1x64xf32>
    %c105 = arith.constant 105 : index
    %c0_8 = arith.constant 0 : index
    %6 = vector.load %arg1[%c105, %c0_8] : memref<112x64xf32, #tpu.memory_space<vmem>>, vector<1x64xf32>
    %c106 = arith.constant 106 : index
    %c0_9 = arith.constant 0 : index
    %7 = vector.load %arg1[%c106, %c0_9] : memref<112x64xf32, #tpu.memory_space<vmem>>, vector<1x64xf32>
    %c107 = arith.constant 107 : index
    %c0_10 = arith.constant 0 : index
    %8 = vector.load %arg1[%c107, %c0_10] : memref<112x64xf32, #tpu.memory_space<vmem>>, vector<1x64xf32>
    %c108 = arith.constant 108 : index
    %c0_11 = arith.constant 0 : index
    %9 = vector.load %arg1[%c108, %c0_11] : memref<112x64xf32, #tpu.memory_space<vmem>>, vector<1x64xf32>
    %c109 = arith.constant 109 : index
    %c0_12 = arith.constant 0 : index
    %10 = vector.load %arg1[%c109, %c0_12] : memref<112x64xf32, #tpu.memory_space<vmem>>, vector<1x64xf32>
    %c110 = arith.constant 110 : index
    %c0_13 = arith.constant 0 : index
    %11 = vector.load %arg1[%c110, %c0_13] : memref<112x64xf32, #tpu.memory_space<vmem>>, vector<1x64xf32>
    %c111 = arith.constant 111 : index
    %c0_14 = arith.constant 0 : index
    %12 = vector.load %arg1[%c111, %c0_14] : memref<112x64xf32, #tpu.memory_space<vmem>>, vector<1x1xf32>
    %cst = arith.constant dense<0.000000e+00> : vector<8x64xf32>
    %13 = tpu.matmul %0, %2, %cst {dimension_numbers = #tpu.dot_dimension_numbers<[1], [0], [0], [1], [0, 0, 1, 1], [], []>} : vector<8x32xf32>, vector<32x64xf32>, vector<8x64xf32> -> vector<8x64xf32>
    %14 = vector.broadcast %5 : vector<1x64xf32> to vector<8x64xf32>
    %15 = arith.addf %13, %14 : vector<8x64xf32>
    %cst_15 = arith.constant dense<0.000000e+00> : vector<8xf32>
    %16 = vector.multi_reduction <add>, %15, %cst_15 [1] : vector<8x64xf32> to vector<8xf32>
    %17 = vector.shape_cast %16 : vector<8xf32> to vector<8x1xf32>
    %cst_16 = arith.constant 6.400000e+01 : f32
    %18 = vector.broadcast %cst_16 : f32 to vector<8x1xf32>
    %19 = arith.divf %17, %18 : vector<8x1xf32>
    %20 = vector.broadcast %19 : vector<8x1xf32> to vector<8x64xf32>
    %21 = arith.subf %15, %20 : vector<8x64xf32>
    %22 = arith.mulf %21, %21 : vector<8x64xf32>
    %cst_17 = arith.constant dense<0.000000e+00> : vector<8xf32>
    %23 = vector.multi_reduction <add>, %22, %cst_17 [1] : vector<8x64xf32> to vector<8xf32>
    %24 = vector.shape_cast %23 : vector<8xf32> to vector<8x1xf32>
    %cst_18 = arith.constant 6.400000e+01 : f32
    %25 = vector.broadcast %cst_18 : f32 to vector<8x1xf32>
    %26 = arith.divf %24, %25 : vector<8x1xf32>
    %cst_19 = arith.constant 9.99999974E-6 : f32
    %27 = vector.broadcast %cst_19 : f32 to vector<8x1xf32>
    %28 = arith.addf %26, %27 : vector<8x1xf32>
    %29 = math.rsqrt %28 : vector<8x1xf32>
    %30 = vector.broadcast %29 : vector<8x1xf32> to vector<8x64xf32>
    %31 = arith.mulf %21, %30 : vector<8x64xf32>
    %32 = vector.broadcast %6 : vector<1x64xf32> to vector<8x64xf32>
    %33 = arith.mulf %31, %32 : vector<8x64xf32>
    %34 = vector.broadcast %7 : vector<1x64xf32> to vector<8x64xf32>
    %35 = arith.addf %33, %34 : vector<8x64xf32>
    %cst_20 = arith.constant 0.000000e+00 : f32
    %36 = vector.broadcast %cst_20 : f32 to vector<8x64xf32>
    %37 = arith.maximumf %35, %36 : vector<8x64xf32>
    %cst_21 = arith.constant dense<0.000000e+00> : vector<8x64xf32>
    %38 = tpu.matmul %37, %3, %cst_21 {dimension_numbers = #tpu.dot_dimension_numbers<[1], [0], [0], [1], [0, 0, 1, 1], [], []>} : vector<8x64xf32>, vector<64x64xf32>, vector<8x64xf32> -> vector<8x64xf32>
    %cst_22 = arith.constant dense<0.000000e+00> : vector<8x64xf32>
    %39 = tpu.matmul %1, %4, %cst_22 {dimension_numbers = #tpu.dot_dimension_numbers<[1], [0], [0], [1], [0, 0, 1, 1], [], []>} : vector<8x8xf32>, vector<8x64xf32>, vector<8x64xf32> -> vector<8x64xf32>
    %40 = arith.addf %38, %39 : vector<8x64xf32>
    %41 = vector.broadcast %8 : vector<1x64xf32> to vector<8x64xf32>
    %42 = arith.addf %40, %41 : vector<8x64xf32>
    %cst_23 = arith.constant dense<0.000000e+00> : vector<8xf32>
    %43 = vector.multi_reduction <add>, %42, %cst_23 [1] : vector<8x64xf32> to vector<8xf32>
    %44 = vector.shape_cast %43 : vector<8xf32> to vector<8x1xf32>
    %cst_24 = arith.constant 6.400000e+01 : f32
    %45 = vector.broadcast %cst_24 : f32 to vector<8x1xf32>
    %46 = arith.divf %44, %45 : vector<8x1xf32>
    %47 = vector.broadcast %46 : vector<8x1xf32> to vector<8x64xf32>
    %48 = arith.subf %42, %47 : vector<8x64xf32>
    %49 = arith.mulf %48, %48 : vector<8x64xf32>
    %cst_25 = arith.constant dense<0.000000e+00> : vector<8xf32>
    %50 = vector.multi_reduction <add>, %49, %cst_25 [1] : vector<8x64xf32> to vector<8xf32>
    %51 = vector.shape_cast %50 : vector<8xf32> to vector<8x1xf32>
    %cst_26 = arith.constant 6.400000e+01 : f32
    %52 = vector.broadcast %cst_26 : f32 to vector<8x1xf32>
    %53 = arith.divf %51, %52 : vector<8x1xf32>
    %cst_27 = arith.constant 9.99999974E-6 : f32
    %54 = vector.broadcast %cst_27 : f32 to vector<8x1xf32>
    %55 = arith.addf %53, %54 : vector<8x1xf32>
    %56 = math.rsqrt %55 : vector<8x1xf32>
    %57 = vector.broadcast %56 : vector<8x1xf32> to vector<8x64xf32>
    %58 = arith.mulf %48, %57 : vector<8x64xf32>
    %59 = vector.broadcast %9 : vector<1x64xf32> to vector<8x64xf32>
    %60 = arith.mulf %58, %59 : vector<8x64xf32>
    %61 = vector.broadcast %10 : vector<1x64xf32> to vector<8x64xf32>
    %62 = arith.addf %60, %61 : vector<8x64xf32>
    %cst_28 = arith.constant 0.000000e+00 : f32
    %63 = vector.broadcast %cst_28 : f32 to vector<8x64xf32>
    %64 = arith.maximumf %62, %63 : vector<8x64xf32>
    %65 = vector.broadcast %11 : vector<1x64xf32> to vector<8x64xf32>
    %66 = arith.mulf %64, %65 : vector<8x64xf32>
    %cst_29 = arith.constant dense<0.000000e+00> : vector<8xf32>
    %67 = vector.multi_reduction <add>, %66, %cst_29 [1] : vector<8x64xf32> to vector<8xf32>
    %68 = vector.shape_cast %67 : vector<8xf32> to vector<8x1xf32>
    %69 = vector.broadcast %12 : vector<1x1xf32> to vector<8x1xf32>
    %70 = arith.addf %68, %69 : vector<8x1xf32>
    %c0_30 = arith.constant 0 : index
    %c0_31 = arith.constant 0 : index
    %71 = vector.load %arg2[%c0_30, %c0_31] : memref<8x1xf32, #tpu.memory_space<vmem>>, vector<8x1xf32>
    tpu.vector_store %arg2[%c0_30, %c0_31], %70 {strides = array<i32>} : memref<8x1xf32, #tpu.memory_space<vmem>>, vector<8x1xf32>,
    return
  }
}

</mosaic_0001>

<bundles_post_ra>
// kernel: critic_forward.1
= control target key start
LH: loop header
LB: loop body
LE: loop exit
PB: predicated region body
PF: predicated region fallthrough
CT: control target
= control target key end

     0   :  { %vm34_vm0 = vcmask 261120   ;;  %vm58_vm1 = vcmask 523264   ;;  %s202_s21 = smov 96   ;;  %v203_v9 = vmov 64.0   ;;  %vm95_vm3 = vcmask 64512   ;;  %s300_s1 = inlined_call_operand.vmem [shape: f32[112,64], index: 1, kind: input, shape index: {}]   ;;  %s301_s0 = inlined_call_operand.vmem [shape: f32[8,40], index: 0, kind: input, shape index: {}]   ;;  %s302_s2 = inlined_call_operand.vmem [shape: f32[8,1], index: 2, kind: output, shape index: {}]  }
   0x1   :  { %v15_v0 = vld [vmem:[%s300_s1 + $0x18] sm:$0xff]  ;;  %v14_v1 = vld [vmem:[%s300_s1 + $0x10] sm:$0xff]  ;;  %v13_v2 = vld [vmem:[%s300_s1 + $0x8] sm:$0xff]  ;;  %196 = vrcp.f32 %v203_v9  ;;  %vm177_vm10 = vcmask 7168  }
   0x2   :  { %50 = vmatpush.msra.mxu0 %v15_v0  ;;  %v12_v3 = vld [vmem:[%s300_s1] sm:$0xff]  ;;  %v188_v5 = vld [vmem:[%s300_s1 + $0x68] ss:$0 sm:$0xff]  ;;  %v23_v21 = vld [vmem:[%s300_s1 + $0x58] sm:$0xff] }
   0x3   :  { %v11_v4 = vld [vmem:[%s301_s0] sm:$0xff]  ;;  %129 = vmatpush.msra.mxu2 %v23_v21  ;;  %v22_v22 = vld [vmem:[%s300_s1 + $0x50] sm:$0xff]  ;;  %v21_v23 = vld [vmem:[%s300_s1 + $0x48] sm:$0xff] }
   0x4   :  { %51 = vmatpush.msra.mxu0 %v14_v1  ;;  %93 = vrot.lane.b32.xlu1 %v11_v4, %s202_s21  ;;  %v20_v24 = vld [vmem:[%s300_s1 + $0x40] sm:$0xff]  ;;  %v19_v25 = vld [vmem:[%s300_s1 + $0x38] sm:$0xff]  ;;  %v18_v26 = vld [vmem:[%s300_s1 + $0x30] sm:$0xff] }
   0x5   :  { %130 = vmatpush.msra.mxu2 %v22_v22  ;;  %v17_v27 = vld [vmem:[%s300_s1 + $0x28] sm:$0xff]  ;;  %v16_v28 = vld [vmem:[%s300_s1 + $0x20] sm:$0xff] }
   0x6   :  { %52 = vmatpush.msra.mxu0 %v13_v2  ;;  %v24_v29 = vld [vmem:[%s300_s1 + $0x60] sm:$0xff]  ;;  %v189_v40 = vld [vmem:[%s300_s1 + $0x69] ss:$0 sm:$0xff]  ;;  %v190_v43 = vld [vmem:[%s300_s1 + $0x6a] ss:$0 sm:$0xff] }
   0x7   :  { %v197_v10 = vpop.eup %196  ;;  %131 = vmatpush.msra.mxu2 %v21_v23  ;;  %113 = vmatpush.msra.mxu1 %v24_v29  ;;  %v191_v48 = vld [vmem:[%s300_s1 + $0x6b] ss:$0 sm:$0xff]  ;;  %v194_v9 = vld [vmem:[%s300_s1 + $0x6e] ss:$0 sm:$0xff] }
   0x8   :  { %53 = vmatpush.msra.mxu0 %v12_v3  ;;  %v63_v11 = vmul.f32 64.0, %v197_v10  ;;  %vm67_vm2 = vweird.f32 %v197_v10  ;;  %v192_v3 = vld [vmem:[%s300_s1 + $0x6c] ss:$0 sm:$0xff] }
   0x9   :  { %183 = vmatmul.msk.f32.vlgmr.msra.gmra.mxu0 %vm34_vm0, %v11_v4  ;;  %132 = vmatpush.msra.mxu2 %v20_v24 }
   0xa   :  { %v64_v12 = vsub.f32 1.0, %v63_v11 }
   0xb   :  { %133 = vmatpush.msra.mxu2 %v19_v25 }
   0xc   :  { %v65_v13 = vmul.f32 %v197_v10, %v64_v12 }
   0xd   :  { %134 = vmatpush.msra.mxu2 %v18_v26 }
   0xe   :  { %v66_v14 = vadd.f32 %v197_v10, %v65_v13  ;;  %v195_v13 = vld [vmem:[%s300_s1 + $0x6f] ss:$0 sm:$0xff] }
   0xf   :  { %135 = vmatpush.msra.mxu2 %v17_v27 }
  0x10   :  { %v238_v15 = vsel %vm67_vm2, %v197_v10, %v66_v14 }
  0x11   :  { %136 = vmatpush.msra.mxu2 %v16_v28 }
  0x76   :  { %v94_v30 = vpop.permute.xlu1 %93 }
  0x77   :  { %184 = vmatmul.msk.f32.vlgmr.msra.gmra.mxu1 %vm95_vm3, %v94_v30 }
  0x86   :  { %v55_v6 = vpop.f32.mrf.mxu0 }
  0x87   :  { %v56_v7 = vadd.f32 %v188_v5, %v55_v6  ;;  %v193_v6 = vld [vmem:[%s300_s1 + $0x6d] ss:$0 sm:$0xff] }
  0x89   :  { %v59_v8 = vsel %vm58_vm1, %v56_v7, 0.0 }
  0x8a   :  { %60 = vadd.xlane.f32.xlu0 %v59_v8 }
  0xf4   :  { %v115_v47 = vpop.f32.mrf.mxu1 }
  0xfd   :  { %v61_v16 = vpop.xlane.xlu0 %60 }
  0xfe   :  { %v69_v17 = vmul.f32 %v238_v15, %v61_v16 }
 0x100   :  { %v70_v18 = vsub.f32 %v56_v7, %v69_v17 }
 0x102   :  { %v71_v19 = vmul.f32 %v70_v18, %v70_v18 }
 0x104   :  { %v72_v20 = vsel %vm58_vm1, %v71_v19, 0.0 }
 0x105   :  { %73 = vadd.xlane.f32.xlu0 %v72_v20 }
 0x178   :  { %v74_v31 = vpop.xlane.xlu0 %73 }
 0x179   :  { %v75_v32 = vmul.f32 %v74_v31, %v238_v15 }
 0x17b   :  { %v76_v33 = vadd.f32 1e-05, %v75_v32 }
 0x17d   :  { %198 = vrsqrt.f32 %v76_v33  ;;  %vm83_vm5 = vweird.f32 %v76_v33 }
 0x183   :  { %v199_v34 = vpop.eup %198 }
 0x184   :  { %v78_v35 = vmul.f32 %v199_v34, %v76_v33  ;;  %vm84_vm4 = vweird.f32 %v199_v34 }
 0x185   :  { %vm85_vm6 = vmor %vm83_vm5, %vm84_vm4 }
 0x186   :  { %v79_v36 = vmul.f32 %v199_v34, %v78_v35 }
 0x188   :  { %v80_v37 = vmul.f32 0.5, %v79_v36 }
 0x18a   :  { %v81_v38 = vsub.f32 1.5, %v80_v37 }
 0x18c   :  { %v82_v39 = vmul.f32 %v199_v34, %v81_v38 }
 0x18e   :  { %v86_v41 = vsel %vm85_vm6, %v199_v34, %v82_v39 }
 0x18f   :  { %v87_v42 = vmul.f32 %v86_v41, %v70_v18 }
 0x191   :  { %v89_v44 = vmul.f32 %v189_v40, %v87_v42 }
 0x193   :  { %v91_v45 = vadd.f32 %v190_v43, %v89_v44 }
 0x195   :  { %v92_v46 = vmax.f32 %v91_v45, 0.0 }
 0x197   :  { %185 = vmatmul.msk.f32.vlgmr.msra.gmra.mxu2 %vm58_vm1, %v92_v46 }
 0x21a   :  { %v138_v49 = vpop.f32.mrf.mxu2 }
 0x21b   :  { %v139_v50 = vadd.f32 %v138_v49, %v115_v47 }
 0x21d   :  { %v142_v51 = vadd.f32 %v191_v48, %v139_v50 }
 0x21f   :  { %v143_v52 = vsel %vm58_vm1, %v142_v51, 0.0 }
 0x220   :  { %144 = vadd.xlane.f32.xlu1 %v143_v52 }
 0x293   :  { %v145_v53 = vpop.xlane.xlu1 %144 }
 0x294   :  { %v146_v54 = vmul.f32 %v145_v53, %v238_v15 }
 0x296   :  { %v147_v55 = vsub.f32 %v142_v51, %v146_v54 }
 0x298   :  { %v148_v56 = vmul.f32 %v147_v55, %v147_v55 }
 0x29a   :  { %v149_v57 = vsel %vm58_vm1, %v148_v56, 0.0 }
 0x29b   :  { %150 = vadd.xlane.f32.xlu2 %v149_v57 }
 0x30e   :  { %v151_v58 = vpop.xlane.xlu2 %150 }
 0x30f   :  { %v152_v59 = vmul.f32 %v151_v58, %v238_v15 }
 0x311   :  { %v153_v60 = vadd.f32 1e-05, %v152_v59 }
 0x313   :  { %200 = vrsqrt.f32 %v153_v60  ;;  %vm160_vm8 = vweird.f32 %v153_v60 }
 0x319   :  { %v201_v61 = vpop.eup %200 }
 0x31a   :  { %v155_v62 = vmul.f32 %v201_v61, %v153_v60  ;;  %vm161_vm7 = vweird.f32 %v201_v61 }
 0x31b   :  { %vm162_vm9 = vmor %vm160_vm8, %vm161_vm7 }
 0x31c   :  { %v156_v63 = vmul.f32 %v201_v61, %v155_v62 }
 0x31e   :  { %v157_v0 = vmul.f32 0.5, %v156_v63 }
 0x320   :  { %v158_v1 = vsub.f32 1.5, %v157_v0 }
 0x322   :  { %v159_v2 = vmul.f32 %v201_v61, %v158_v1 }
 0x324   :  { %v163_v4 = vsel %vm162_vm9, %v201_v61, %v159_v2 }
 0x325   :  { %v164_v5 = vmul.f32 %v163_v4, %v147_v55 }
 0x327   :  { %v166_v7 = vmul.f32 %v192_v3, %v164_v5 }
 0x329   :  { %v168_v8 = vadd.f32 %v193_v6, %v166_v7 }
 0x32b   :  { %v169_v10 = vmax.f32 %v168_v8, 0.0 }
 0x32d   :  { %v171_v11 = vmul.f32 %v194_v9, %v169_v10 }
 0x32f   :  { %v172_v12 = vsel %vm58_vm1, %v171_v11, 0.0 }
 0x330   :  { %173 = vadd.xlane.f32.xlu2 %v172_v12 }
 0x3a3   :  { %v174_v14 = vpop.xlane.xlu2 %173 }
 0x3a4   :  { %v176_v15 = vadd.f32 %v195_v13, %v174_v14 }
 0x3a6   :  { %178 = vst.msk [vmem:[%s302_s2] sm:$0xff] %vm177_vm10, %v176_v15 }

</bundles_post_ra>
